<compile_context>
chip_gen: v7x
topology: tpu7x:2x2x1
jax: 0.10.0
libtpu: 0.0.40
codegen_flags: <defaults>
</compile_context>

<pallas_src>
import numpy as np
import jax
import jax.numpy as jnp
from jax.experimental import pallas as pl
from jax.experimental.pallas import tpu as pltpu


def _round_up(x: int, m: int) -> int:
    return (x + m - 1) // m * m


# ----------------------------------------------------------------------------
# Pallas kernels (one GEMM tile + bias, f32 accumulation).
# ----------------------------------------------------------------------------
def _kernel_et(w_ref, p_ref, b_ref, o_ref):
    # w: (E, K), p: (K, TM), b: (E, 1)  ->  o: (E, TM)   [lane-dense output]
    acc = jnp.dot(w_ref[...], p_ref[...], preferred_element_type=jnp.float32)
    o_ref[...] = (acc + b_ref[...]).astype(o_ref.dtype)


def _kernel_me(p_ref, w_ref, b_ref, o_ref):
    # p: (TM, K), w: (K, E), b: (1, E)  ->  o: (TM, E)   [channels-last path]
    acc = jnp.dot(p_ref[...], w_ref[...], preferred_element_type=jnp.float32)
    o_ref[...] = (acc + b_ref[...]).astype(o_ref.dtype)


def _vmem_limit(tile_bytes: int) -> int:
    # double-buffered tiles + weight/bias + headroom, capped for v7x (64 MiB).
    return int(min(48 * 1024 * 1024, max(32 * 1024 * 1024, tile_bytes + 16 * 1024 * 1024)))


# ----------------------------------------------------------------------------
# GEMM drivers.
# ----------------------------------------------------------------------------
def _proj_nchw(patches_t, w_et, bias_f32, out_dtype, tile_m):
    """patches_t: (B, K, Mb), w_et: (E, K), bias: (E,) -> (B, E, Mb)."""
    B, K, Mb = patches_t.shape
    E = w_et.shape[0]
    TM = min(_round_up(int(tile_m), 128), _round_up(Mb, 128))
    grid = (B, pl.cdiv(Mb, TM))

    p_item = patches_t.dtype.itemsize
    o_item = jnp.dtype(out_dtype).itemsize
    tile_bytes = 2 * TM * (K * p_item + E * o_item) + K * E * w_et.dtype.itemsize

    cost = pl.CostEstimate(
        flops=2 * B * Mb * K * E,
        transcendentals=0,
        bytes_accessed=B * Mb * (K * p_item + E * o_item) + K * E * w_et.dtype.itemsize + E * 4,
    )

    return pl.pallas_call(
        _kernel_et,
        out_shape=jax.ShapeDtypeStruct((B, E, Mb), out_dtype),
        grid=grid,
        in_specs=[
            pl.BlockSpec((E, K), lambda b, i: (0, 0)),            # weight: VMEM-resident
            pl.BlockSpec((None, K, TM), lambda b, i: (b, 0, i)),  # patches_T: streamed
            pl.BlockSpec((E, 1), lambda b, i: (0, 0)),            # bias: VMEM-resident
        ],
        out_specs=pl.BlockSpec((None, E, TM), lambda b, i: (b, 0, i)),
        compiler_params=pltpu.CompilerParams(
            dimension_semantics=("parallel", "parallel"),
            vmem_limit_bytes=_vmem_limit(tile_bytes),
        ),
        cost_estimate=cost,
    )(w_et, patches_t, bias_f32.reshape(E, 1))


def _proj_cl(patches, w_ke, bias_f32, out_dtype, tile_m):
    """patches: (B, Mb, K), w_ke: (K, E), bias: (E,) -> (B, Mb, E)."""
    B, Mb, K = patches.shape
    E = w_ke.shape[1]
    TM = min(_round_up(int(tile_m), 128), _round_up(Mb, 8))
    grid = (B, pl.cdiv(Mb, TM))

    p_item = patches.dtype.itemsize
    o_item = jnp.dtype(out_dtype).itemsize
    tile_bytes = 2 * TM * (K * p_item + E * o_item) + K * E * w_ke.dtype.itemsize

    cost = pl.CostEstimate(
        flops=2 * B * Mb * K * E,
        transcendentals=0,
        bytes_accessed=B * Mb * (K * p_item + E * o_item) + K * E * w_ke.dtype.itemsize + E * 4,
    )

    return pl.pallas_call(
        _kernel_me,
        out_shape=jax.ShapeDtypeStruct((B, Mb, E), out_dtype),
        grid=grid,
        in_specs=[
            pl.BlockSpec((None, TM, K), lambda b, i: (b, i, 0)),  # patches: streamed
            pl.BlockSpec((K, E), lambda b, i: (0, 0)),            # weight: VMEM-resident
            pl.BlockSpec((1, E), lambda b, i: (0, 0)),            # bias: VMEM-resident
        ],
        out_specs=pl.BlockSpec((None, TM, E), lambda b, i: (b, i, 0)),
        compiler_params=pltpu.CompilerParams(
            dimension_semantics=("parallel", "parallel"),
            vmem_limit_bytes=_vmem_limit(tile_bytes),
        ),
        cost_estimate=cost,
    )(patches, w_ke, bias_f32.reshape(1, E))


# ----------------------------------------------------------------------------
# PatchEmbed3D forward (wrapper).
# ----------------------------------------------------------------------------
def patch_embed_3d(x, weight, bias, patch_size, *,
                   compute_dtype=None, out_dtype=None,
                   channels_last=False, tile_m=8192):
    """x: (B, C, D, H, W); weight: (E, C, pd, ph, pw); bias: (E,).

    compute_dtype: optional GEMM operand dtype (e.g. jnp.bfloat16); f32 accumulate.
    out_dtype:     output dtype (default x.dtype); bf16 halves output HBM traffic.
    channels_last: if True return (B, Dp, Hp, Wp, E); else NCDHW (B, E, Dp, Hp, Wp).
    tile_m:        M-tile size; 8192 default, up to 16384 on v5e/v6e, <=8192 on v7x.
    """
    pd, ph, pw = patch_size
    B, C, D, H, W = x.shape

    # Pad trailing side of D / H / W to a multiple of the patch size
    # (mirrors the F.pad intent of the reference forward()).
    pad_d, pad_h, pad_w = (-D) % pd, (-H) % ph, (-W) % pw
    if pad_d or pad_h or pad_w:
        x = jnp.pad(x, ((0, 0), (0, 0), (0, pad_d), (0, pad_h), (0, pad_w)))
        D, H, W = D + pad_d, H + pad_h, W + pad_w

    Dp, Hp, Wp = D // pd, H // ph, W // pw
    E = weight.shape[0]
    K = C * pd * ph * pw
    Mb = Dp * Hp * Wp

    if out_dtype is None:
        out_dtype = x.dtype
    cdt = compute_dtype if compute_dtype is not None else x.dtype

    w2 = weight.reshape(E, K).astype(cdt)         # (E, K), k = (c, kd, kh, kw)
    bias_f32 = bias.astype(jnp.float32)

    xr = x.reshape(B, C, Dp, pd, Hp, ph, Wp, pw)

    if channels_last:
        # (B, Dp, Hp, Wp, C, pd, ph, pw) -> (B, Mb, K)
        patches = xr.transpose(0, 2, 4, 6, 1, 3, 5, 7).reshape(B, Mb, K).astype(cdt)
        out = _proj_cl(patches, w2.T, bias_f32, out_dtype, tile_m)
        return out.reshape(B, Dp, Hp, Wp, E)

    # Transposed (K-major) patches so the kernel writes lane-dense (E, TM)
    # blocks and the NCDHW result is a free reshape.
    # (B, C, pd, ph, pw, Dp, Hp, Wp) -> (B, K, Mb)
    patches_t = xr.transpose(0, 1, 3, 5, 7, 2, 4, 6).reshape(B, K, Mb).astype(cdt)
    out = _proj_nchw(patches_t, w2, bias_f32, out_dtype, tile_m)
    return out.reshape(B, E, Dp, Hp, Wp)


patch_embed_3d_jit = jax.jit(
    patch_embed_3d,
    static_argnames=("patch_size", "compute_dtype", "out_dtype",
                     "channels_last", "tile_m"),
)


# ----------------------------------------------------------------------------
# Pure-JAX reference (for correctness check).
# ----------------------------------------------------------------------------
def patch_embed_3d_ref(x, weight, bias, patch_size):
    pd, ph, pw = patch_size
    out = jax.lax.conv_general_dilated(
        x, weight,
        window_strides=(pd, ph, pw),
        padding="VALID",
        dimension_numbers=("NCDHW", "OIDHW", "NCDHW"),
    )
    return out + bias.reshape(1, -1, 1, 1, 1)


if __name__ == "__main__":
    # Small, deterministic example consistent with the module defaults
    # (Swin-style patch_size=(2,4,4), in_channels=3, embed_dim=96).
    key = jax.random.PRNGKey(0)
    k_x, k_w, k_b, k_x2 = jax.random.split(key, 4)

    patch_size = (2, 4, 4)          # (pd, ph, pw)
    in_channels = 3
    embed_dim = 96
    B, D, H, W = 2, 4, 8, 8         # divisible by patch_size -> no padding path

    x = jax.random.normal(k_x, (B, in_channels, D, H, W), dtype=jnp.float32)

    # Deterministic synthetic Conv3d parameters (same shapes as nn.Conv3d).
    fan_in = in_channels * patch_size[0] * patch_size[1] * patch_size[2]
    bound = 1.0 / (fan_in ** 0.5)
    weight = jax.random.uniform(
        k_w, (embed_dim, in_channels) + patch_size,
        minval=-bound, maxval=bound, dtype=jnp.float32)
    bias = jax.random.uniform(
        k_b, (embed_dim,), minval=-bound, maxval=bound, dtype=jnp.float32)

    ref = patch_embed_3d_ref(x, weight, bias, patch_size)
    expected_shape = (B, embed_dim,
                      D // patch_size[0], H // patch_size[1], W // patch_size[2])

    # f32 path (exact semantics of the PyTorch module, NCDHW output).
    out_f32 = jax.block_until_ready(patch_embed_3d_jit(x, weight, bias, patch_size))
    assert out_f32.shape == ref.shape == expected_shape
    assert out_f32.dtype == jnp.float32
    assert jnp.allclose(out_f32, ref, atol=1e-4, rtol=1e-4), "f32 mismatch vs reference"

    # bf16 operand path (bandwidth optimization; f32 accumulation / f32 output).
    out_bf16 = jax.block_until_ready(
        patch_embed_3d_jit(x, weight, bias, patch_size, compute_dtype=jnp.bfloat16))
    assert out_bf16.shape == expected_shape
    assert out_bf16.dtype == jnp.float32
    assert jnp.allclose(out_bf16, ref, atol=3e-2, rtol=3e-2), "bf16 mismatch vs reference"

    # channels-last output path (skips the NCDHW layout entirely).
    out_cl = jax.block_until_ready(
        patch_embed_3d_jit(x, weight, bias, patch_size, channels_last=True))
    assert out_cl.shape == (B, expected_shape[2], expected_shape[3], expected_shape[4], embed_dim)
    assert jnp.allclose(out_cl, jnp.transpose(ref, (0, 2, 3, 4, 1)),
                        atol=1e-4, rtol=1e-4), "channels_last mismatch vs reference"

    # Non-divisible D/H/W exercises the trailing zero-pad path.
    D2, H2, W2 = 5, 9, 10
    x2 = jax.random.normal(k_x2, (B, in_channels, D2, H2, W2), dtype=jnp.float32)
    x2_pad = jnp.pad(x2, ((0, 0), (0, 0),
                          (0, (-D2) % patch_size[0]),
                          (0, (-H2) % patch_size[1]),
                          (0, (-W2) % patch_size[2])))
    ref2 = patch_embed_3d_ref(x2_pad, weight, bias, patch_size)
    out2 = jax.block_until_ready(patch_embed_3d_jit(x2, weight, bias, patch_size))
    assert out2.shape == ref2.shape
    assert jnp.allclose(out2, ref2, atol=1e-4, rtol=1e-4), "padded-input mismatch vs reference"

    print("KERNEL_OK")
</pallas_src>

<mosaic_0001>
module attributes {stable_mosaic.version = 11 : i64} {
  func.func @_kernel_et(%arg0: i32, %arg1: i32, %arg2: memref<96x96xf32, #tpu.memory_space<vmem>>, %arg3: memref<1x96x128xf32, #tpu.memory_space<vmem>>, %arg4: memref<96x1xf32, #tpu.memory_space<vmem>>, %arg5: memref<1x96x128xf32, #tpu.memory_space<vmem>>) attributes {dimension_semantics = [#tpu.dimension_semantics<parallel>, #tpu.dimension_semantics<parallel>], iteration_bounds = array<i64: 2, 1>, scalar_prefetch = 0 : i64, scratch_operands = 0 : i64, tpu.core_type = #tpu.core_type<tc>, window_params = [{pipeline_mode = #tpu.pipeline_mode<synchronous>, transform_indices = @transform_0, window_bounds = array<i64: 96, 96>}, {transform_indices = @transform_1, window_bounds = array<i64: 1, 96, 128>}, {pipeline_mode = #tpu.pipeline_mode<synchronous>, transform_indices = @transform_2, window_bounds = array<i64: 96, 1>}, {transform_indices = @transform_3, window_bounds = array<i64: 1, 96, 128>}]} {
    %c0 = arith.constant 0 : index
    %c0_0 = arith.constant 0 : index
    %0 = vector.load %arg2[%c0, %c0_0] : memref<96x96xf32, #tpu.memory_space<vmem>>, vector<96x96xf32>
    %c0_1 = arith.constant 0 : index
    %c0_2 = arith.constant 0 : index
    %c0_3 = arith.constant 0 : index
    %1 = vector.load %arg3[%c0_1, %c0_2, %c0_3] : memref<1x96x128xf32, #tpu.memory_space<vmem>>, vector<1x96x128xf32>
    %2 = vector.shape_cast %1 : vector<1x96x128xf32> to vector<96x128xf32>
    %cst = arith.constant dense<0.000000e+00> : vector<96x128xf32>
    %3 = tpu.matmul %0, %2, %cst {dimension_numbers = #tpu.dot_dimension_numbers<[1], [0], [0], [1], [0, 0, 1, 1], [], []>} : vector<96x96xf32>, vector<96x128xf32>, vector<96x128xf32> -> vector<96x128xf32>
    %c0_4 = arith.constant 0 : index
    %c0_5 = arith.constant 0 : index
    %4 = vector.load %arg4[%c0_4, %c0_5] : memref<96x1xf32, #tpu.memory_space<vmem>>, vector<96x1xf32>
    %5 = vector.broadcast %4 : vector<96x1xf32> to vector<96x128xf32>
    %6 = arith.addf %3, %5 : vector<96x128xf32>
    %c0_6 = arith.constant 0 : index
    %c0_7 = arith.constant 0 : index
    %c0_8 = arith.constant 0 : index
    %7 = vector.load %arg5[%c0_6, %c0_7, %c0_8] : memref<1x96x128xf32, #tpu.memory_space<vmem>>, vector<1x96x128xf32>
    %8 = vector.shape_cast %7 : vector<1x96x128xf32> to vector<96x128xf32>
    %9 = vector.shape_cast %6 : vector<96x128xf32> to vector<1x96x128xf32>
    tpu.vector_store %arg5[%c0_6, %c0_7, %c0_8], %9 {strides = array<i32>} : memref<1x96x128xf32, #tpu.memory_space<vmem>>, vector<1x96x128xf32>,
    return
  }
  func.func @transform_0(%arg0: i32, %arg1: i32) -> (i32, i32) {
    %c0_i32 = arith.constant 0 : i32
    %c0_i32_0 = arith.constant 0 : i32
    %c0_i32_1 = arith.constant 0 : i32
    return %c0_i32, %c0_i32_0 : i32, i32
  }
  func.func @transform_1(%arg0: i32, %arg1: i32) -> (i32, i32, i32) {
    %c0_i32 = arith.constant 0 : i32
    %c0_i32_0 = arith.constant 0 : i32
    return %arg0, %c0_i32, %arg1 : i32, i32, i32
  }
  func.func @transform_2(%arg0: i32, %arg1: i32) -> (i32, i32) {
    %c0_i32 = arith.constant 0 : i32
    %c0_i32_0 = arith.constant 0 : i32
    %c0_i32_1 = arith.constant 0 : i32
    return %c0_i32, %c0_i32_0 : i32, i32
  }
  func.func @transform_3(%arg0: i32, %arg1: i32) -> (i32, i32, i32) {
    %c0_i32 = arith.constant 0 : i32
    %c0_i32_0 = arith.constant 0 : i32
    return %arg0, %c0_i32, %arg1 : i32, i32, i32
  }
}

</mosaic_0001>

<bundles_post_ra>
// kernel: patch_embed_3d.1
= control target key start
LH: loop header
LB: loop body
LE: loop exit
PB: predicated region body
PF: predicated region fallthrough
CT: control target
= control target key end

     0   :  { %s751_s12 = smov 0   ;;  %s753_s13 = smov 0   ;;  %s903_s0 = inlined_call_operand.vmem [shape: f32[96,96], index: 0, kind: input, shape index: {}]   ;;  %s904_s1 = inlined_call_operand.vmem [shape: f32[2,96,8], index: 1, kind: input, shape index: {}]   ;;  %s905_s2 = inlined_call_operand.vmem [shape: f32[96,1], index: 2, kind: input, shape index: {}]   ;;  %s906_s3 = inlined_call_operand.vmem [shape: f32[2,96,8], index: 3, kind: output, shape index: {}]  }
   0x1   :  { %s755_s14 = smov 0  }
   0x2 LB: > { %s25_s15 = sadd.s32 1, %s724_s13  ;;  %p559_p0 = scmp.ge.s32.totalorder %s728_s14, 1  ;;  %s728_s14 = sphi %s755_s14, %s13_s14   ;;  %s724_s13 = sphi %s753_s13, %s908_s13   ;;  %s720_s12 = sphi %s751_s12, %s907_s12  }
   0x3   : > { %p27_p1 = scmp.ge.s32.totalorder %s25_s15, 2  ;;  %p156_p2 = scmp.lt.s32.totalorder %s728_s14, 3 }
   0x5   : > { %s910_s15 = smov (%p27_p1, %s25_s15), 0  ;;  %p157_p3 = pnand %p559_p0, %p156_p2 }
   0x6   : > { %p186_p4 = scmp.lt.s32.totalorder (!%p157_p3), %s720_s12, 1  ;;  %v202_v0 = vld [vmem:[%s903_s0] sm:$0xff] (!%p157_p3)  ;;  %vm298_vm0 = vcmask (!%p157_p3), 785408   ;;  %v208_v1 = vld [vmem:[%s903_s0 + $0x30] sm:$0xff] (!%p157_p3)  ;;  %v730_v2 = vmov (!%p157_p3), 0   ;;  %v229_v5 = vld [vmem:[%s905_s2 + $0x18] sm:$0xff] (!%p157_p3) }
   0x7   : > { %160 = sbr.rel (%p157_p3) target bundleno = 269 (0x10d), region = 32  ;;  %624 = vmatprep.mubr.msk.f32.mxu0 (!%p157_p3), %vm298_vm0, %v202_v0  ;;  %633 = vmatprep.mubr.msk.f32.mxu1 (!%p157_p3), %vm298_vm0, %v208_v1  ;;  %v228_v3 = vld [vmem:[%s905_s2 + $0x10] sm:$0xff] (!%p157_p3)  ;;  %v226_v4 = vld [vmem:[%s905_s2] sm:$0xff] (!%p157_p3)  ;;  %v227_v6 = vld [vmem:[%s905_s2 + $0x8] sm:$0xff] (!%p157_p3) }
   0x8   : > { %705 = vset.pattern.permute.xlu1 (!%p157_p3), %v730_v2  ;;  %704 = vset.pattern.permute.xlu0 (!%p157_p3), %v730_v2  ;;  %v231_v15 = vld [vmem:[%s905_s2 + $0x28] sm:$0xff] (!%p157_p3)  ;;  %v230_v16 = vld [vmem:[%s905_s2 + $0x20] sm:$0xff] (!%p157_p3)  ;;  %v233_v20 = vld [vmem:[%s905_s2 + $0x38] sm:$0xff] (!%p157_p3) }
   0x9   : > { %250 = vperm.xlu1 (!%p157_p3), %705, %v228_v3   ;;  %240 = vperm.xlu0 (!%p157_p3), %704, %v226_v4   ;;  %v232_v21 = vld [vmem:[%s905_s2 + $0x30] sm:$0xff] (!%p157_p3)  ;;  %v235_v25 = vld [vmem:[%s905_s2 + $0x48] sm:$0xff] (!%p157_p3)  ;;  %v234_v26 = vld [vmem:[%s905_s2 + $0x40] sm:$0xff] (!%p157_p3) }
   0xa   : > { %v237_v30 = vld [vmem:[%s905_s2 + $0x58] sm:$0xff] (!%p157_p3)  ;;  %v236_v31 = vld [vmem:[%s905_s2 + $0x50] sm:$0xff] (!%p157_p3)  ;;  %v203_v33 = vld [vmem:[%s903_s0 + $0x8] sm:$0xff] (!%p157_p3) }
   0xb   : > { %v209_v34 = vld [vmem:[%s903_s0 + $0x38] sm:$0xff] (!%p157_p3)  ;;  %v204_v35 = vld [vmem:[%s903_s0 + $0x10] sm:$0xff] (!%p157_p3)  ;;  %v210_v36 = vld [vmem:[%s903_s0 + $0x40] sm:$0xff] (!%p157_p3) }
   0xc   : > { %v205_v37 = vld [vmem:[%s903_s0 + $0x18] sm:$0xff] (!%p157_p3)  ;;  %v211_v38 = vld [vmem:[%s903_s0 + $0x48] sm:$0xff] (!%p157_p3)  ;;  %v206_v39 = vld [vmem:[%s903_s0 + $0x20] sm:$0xff] (!%p157_p3) }
   0xd   : > { %255 = vperm.xlu1 (!%p157_p3), %705, %v229_v5   ;;  %245 = vperm.xlu0 (!%p157_p3), %704, %v227_v6   ;;  %v212_v40 = vld [vmem:[%s903_s0 + $0x50] sm:$0xff] (!%p157_p3)  ;;  %v207_v41 = vld [vmem:[%s903_s0 + $0x28] sm:$0xff] (!%p157_p3)  ;;  %v213_v42 = vld [vmem:[%s903_s0 + $0x58] sm:$0xff] (!%p157_p3) }
   0xe   : > { %s912_s12 = smov (!%p186_p4, %s720_s12), 1 }
   0xf   : > { %s678_s20 = smul.u32 96, %s912_s12 }
  0x11   : > { %s791_s27 = scalar_lea.vmem %s904_s1, %s678_s20  ;;  %265 = vperm.xlu1 %705, %v231_v15   ;;  %260 = vperm.xlu0 %704, %v230_v16   ;;  %s880_s26 = scalar_lea.vmem %s906_s3, %s678_s20 }
  0x12   : > { %v214_v7 = vld [vmem:[%s791_s27] sm:$0xff]  ;;  %v215_v8 = vld [vmem:[%s791_s27 + $0x8] sm:$0xff]  ;;  %v216_v9 = vld [vmem:[%s791_s27 + $0x10] sm:$0xff] }
  0x13   : > { %v642_v10 = vpack.c.bf16 %v215_v8, %v214_v7  ;;  %v217_v11 = vld [vmem:[%s791_s27 + $0x18] sm:$0xff]  ;;  %v218_v13 = vld [vmem:[%s791_s27 + $0x20] sm:$0xff]  ;;  %v219_v14 = vld [vmem:[%s791_s27 + $0x28] sm:$0xff] }
  0x14   : > { %v646_v12 = vpack.c.bf16 %v217_v11, %v216_v9  ;;  %v650_v17 = vpack.c.bf16 %v219_v14, %v218_v13  ;;  %v220_v18 = vld [vmem:[%s791_s27 + $0x30] sm:$0xff]  ;;  %v221_v19 = vld [vmem:[%s791_s27 + $0x38] sm:$0xff]  ;;  %v222_v23 = vld [vmem:[%s791_s27 + $0x40] sm:$0xff] }
  0x15   : > { %643 = vmatprep.subr.bf16.mxu0 %v642_v10  ;;  %666 = vmatprep.subr.bf16.mxu1 %v642_v10  ;;  %v654_v22 = vpack.c.bf16 %v221_v19, %v220_v18  ;;  %v223_v24 = vld [vmem:[%s791_s27 + $0x48] sm:$0xff]  ;;  %v224_v28 = vld [vmem:[%s791_s27 + $0x50] sm:$0xff]  ;;  %v225_v29 = vld [vmem:[%s791_s27 + $0x58] sm:$0xff] }
  0x16   : > { %645 = vmatpush3.bf16.msra.mxu0 %v642_v10  ;;  %672 = vmatpush3.bf16.msra.mxu1 %v642_v10  ;;  %v658_v27 = vpack.c.bf16 %v223_v24, %v222_v23  ;;  %v662_v32 = vpack.c.bf16 %v225_v29, %v224_v28 }
  0x17   : > { %647 = vmatprep.subr.bf16.mxu0 %v646_v12  ;;  %667 = vmatprep.subr.bf16.mxu1 %v646_v12 }
  0x18   : > { %275 = vperm.xlu1 %705, %v233_v20   ;;  %270 = vperm.xlu0 %704, %v232_v21  }
  0x1a   : > { %649 = vmatpush3.bf16.msra.mxu0 %v646_v12  ;;  %673 = vmatpush3.bf16.msra.mxu1 %v646_v12 }
  0x1b   : > { %651 = vmatprep.subr.bf16.mxu0 %v650_v17  ;;  %668 = vmatprep.subr.bf16.mxu1 %v650_v17 }
  0x1c   : > { %285 = vperm.xlu1 %705, %v235_v25   ;;  %280 = vperm.xlu0 %704, %v234_v26  }
  0x1e   : > { %653 = vmatpush3.bf16.msra.mxu0 %v650_v17  ;;  %674 = vmatpush3.bf16.msra.mxu1 %v650_v17 }
  0x1f   : > { %655 = vmatprep.subr.bf16.mxu0 %v654_v22  ;;  %669 = vmatprep.subr.bf16.mxu1 %v654_v22 }
  0x20   : > { %295 = vperm.xlu1 %705, %v237_v30   ;;  %290 = vperm.xlu0 %704, %v236_v31  }
  0x22   : > { %657 = vmatpush3.bf16.msra.mxu0 %v654_v22  ;;  %675 = vmatpush3.bf16.msra.mxu1 %v654_v22 }
  0x23   : > { %659 = vmatprep.subr.bf16.mxu0 %v658_v27  ;;  %670 = vmatprep.subr.bf16.mxu1 %v658_v27 }
  0x26   : > { %661 = vmatpush3.bf16.msra.mxu0 %v658_v27  ;;  %676 = vmatpush3.bf16.msra.mxu1 %v658_v27 }
  0x27   : > { %663 = vmatprep.subr.bf16.mxu0 %v662_v32  ;;  %671 = vmatprep.subr.bf16.mxu1 %v662_v32 }
  0x2a   : > { %665 = vmatpush3.bf16.msra.mxu0 %v662_v32  ;;  %677 = vmatpush3.bf16.msra.mxu1 %v662_v32 }
  0x2d   : > { %625 = vmatmul.mubr.msk.f32.vlgmr.msra.gmra.mrb[0].mxu0 %vm298_vm0, %v203_v33  ;;  %634 = vmatmul.mubr.msk.f32.vlgmr.msra.gmra.mrb[0].mxu1 %vm298_vm0, %v209_v34 }
  0x2e   : > { %627 = vmatprep.mubr.msk.f32.mxu0 %vm298_vm0, %v204_v35  ;;  %636 = vmatprep.mubr.msk.f32.mxu1 %vm298_vm0, %v210_v36 }
  0x31   : > { %628 = vmatmul.mubr.msk.f32.gmra.mrb[2].mxu0 %vm298_vm0, %v205_v37  ;;  %637 = vmatmul.mubr.msk.f32.gmra.mrb[2].mxu1 %vm298_vm0, %v211_v38 }
  0x32   : > { %630 = vmatprep.mubr.msk.f32.mxu0 %vm298_vm0, %v206_v39  ;;  %639 = vmatprep.mubr.msk.f32.mxu1 %vm298_vm0, %v212_v40 }
  0x35   : > { %631 = vmatmul.mubr.msk.f32.gmra.mrb[4].mxu0 %vm298_vm0, %v207_v41  ;;  %640 = vmatmul.mubr.msk.f32.gmra.mrb[4].mxu1 %vm298_vm0, %v213_v42 }
  0x88   : > { %v251_v43 = vpop.permute.xlu1 %250  ;;  %v241_v44 = vpop.permute.xlu0 %240 }
  0x8c   : > { %v256_v45 = vpop.permute.xlu1 %255  ;;  %v246_v46 = vpop.permute.xlu0 %245 }
  0x90   : > { %v266_v47 = vpop.permute.xlu1 %265  ;;  %v261_v48 = vpop.permute.xlu0 %260 }
  0x97   : > { %v276_v49 = vpop.permute.xlu1 %275  ;;  %v271_v50 = vpop.permute.xlu0 %270 }
  0x9b   : > { %v286_v51 = vpop.permute.xlu1 %285  ;;  %v281_v52 = vpop.permute.xlu0 %280 }
  0x9f   : > { %v296_v5 = vpop.permute.xlu1 %295  ;;  %v291_v6 = vpop.permute.xlu0 %290 }
 0x100   : > { %v626_v53 = vpop.f32.mrb[0].mxu0  ;;  %v635_v54 = vpop.f32.mrb[0].mxu1 }
 0x101   : > { %v407_v55 = vadd.f32 %v626_v53, %v246_v46  ;;  %v437_v56 = vadd.f32 %v635_v54, %v276_v49  ;;  %v401_v57 = vpop.f32.mrb[1].mxu0  ;;  %v431_v58 = vpop.f32.mrb[1].mxu1 }
 0x102   : > { %v402_v59 = vadd.f32 %v401_v57, %v241_v44  ;;  %v432_v60 = vadd.f32 %v431_v58, %v271_v50 }
 0x103   : > { %461 = vst [vmem:[%s880_s26 + $0x8] sm:$0xff] %v407_v55  ;;  %467 = vst [vmem:[%s880_s26 + $0x38] sm:$0xff] %v437_v56 }
 0x104   : > { %460 = vst [vmem:[%s880_s26] sm:$0xff] %v402_v59  ;;  %466 = vst [vmem:[%s880_s26 + $0x30] sm:$0xff] %v432_v60  ;;  %v629_v61 = vpop.f32.mrb[2].mxu0  ;;  %v638_v62 = vpop.f32.mrb[2].mxu1 }
 0x105   : > { %v417_v63 = vadd.f32 %v629_v61, %v256_v45  ;;  %v447_v0 = vadd.f32 %v638_v62, %v286_v51  ;;  %v411_v1 = vpop.f32.mrb[3].mxu0  ;;  %v441_v2 = vpop.f32.mrb[3].mxu1 }
 0x106   : > { %v412_v3 = vadd.f32 %v411_v1, %v251_v43  ;;  %v442_v4 = vadd.f32 %v441_v2, %v281_v52 }
 0x107   : > { %463 = vst [vmem:[%s880_s26 + $0x18] sm:$0xff] %v417_v63  ;;  %469 = vst [vmem:[%s880_s26 + $0x48] sm:$0xff] %v447_v0 }
 0x108   : > { %462 = vst [vmem:[%s880_s26 + $0x10] sm:$0xff] %v412_v3  ;;  %468 = vst [vmem:[%s880_s26 + $0x40] sm:$0xff] %v442_v4  ;;  %v632_v7 = vpop.f32.mrb[4].mxu0  ;;  %v641_v8 = vpop.f32.mrb[4].mxu1 }
 0x109   : > { %v427_v9 = vadd.f32 %v632_v7, %v266_v47  ;;  %v457_v10 = vadd.f32 %v641_v8, %v296_v5  ;;  %v421_v11 = vpop.f32.mrb[5].mxu0  ;;  %v451_v12 = vpop.f32.mrb[5].mxu1 }
 0x10a   : > { %v422_v13 = vadd.f32 %v421_v11, %v261_v48  ;;  %v452_v14 = vadd.f32 %v451_v12, %v291_v6 }
 0x10b   : > { %465 = vst [vmem:[%s880_s26 + $0x28] sm:$0xff] %v427_v9  ;;  %471 = vst [vmem:[%s880_s26 + $0x58] sm:$0xff] %v457_v10 }
 0x10c   : > { %464 = vst [vmem:[%s880_s26 + $0x20] sm:$0xff] %v422_v13  ;;  %470 = vst [vmem:[%s880_s26 + $0x50] sm:$0xff] %v452_v14 }
 0x10d PF: > { %s13_s14 = sadd.s32 1, %s728_s14   ;;  %s907_s12 = smov %s724_s13 }
 0x10e   : > { %p10_p5 = scmp.ge.s32.totalorder %s13_s14, 4   ;;  %s908_s13 = smov %s910_s15 }
 0x110   :  { %12 = sbr.rel (!%p10_p5) target bundleno = 2 (0x2), region = 62 }

</bundles_post_ra>
